<compile_context>
chip_gen: v5e
topology: v5e:2x2
jax: 0.10.0
libtpu: 0.0.40
codegen_flags: <defaults>
</compile_context>

<pallas_src>
import math

import jax
import jax.numpy as jnp
from jax import lax
from jax.experimental import pallas as pl
from jax.experimental.pallas import tpu as pltpu

K_IN = 784    # 28*28 flattened input features
K_PAD = 896   # next multiple of 128 (lane-aligned contracting dim)
N_OUT = 256   # fc1 output features (2x128: lane-dense output, unmasked stores)


def fc_relu_kernel(x_ref, w_ref, b_ref, o_ref):
    """relu(x @ w.T + b) for one batch tile.

    x_ref: [TM, K_PAD]     bf16 activation tile
    w_ref: [N_OUT, K_PAD]  bf16 weight in PyTorch layout (no transpose needed)
    b_ref: [1, N_OUT]      f32 bias
    o_ref: [TM, N_OUT]     f32 output tile
    """
    acc = lax.dot_general(
        x_ref[...],
        w_ref[...],
        dimension_numbers=(((1,), (1,)), ((), ())),   # contract K with K (x @ w.T)
        preferred_element_type=jnp.float32,
    )
    acc = acc + b_ref[...]
    o_ref[...] = jnp.maximum(acc, 0.0).astype(o_ref.dtype)


def _round_up(x, m):
    return (x + m - 1) // m * m


def fashion_mnist_cnn_forward(x, w, b):
    """Forward pass of FashionMNIST_CNN: relu(fc1(x.view(-1, 784))).

    x: [B, 1, 28, 28] (or anything whose trailing dims multiply to 784)
    w: [256, 784]  (PyTorch nn.Linear weight layout, NOT transposed)
    b: [256]
    returns: [B, 256] float32
    """
    # NOTE: for tiny batches (B <= ~32) plain XLA (jnp.maximum(x @ w.T + b, 0))
    # is latency-competitive; the Pallas path pays off for large B.
    B = x.shape[0]

    # Batch tile: multiple of 8 sublanes, capped at 256 rows per grid step.
    TM = min(256, _round_up(max(B, 1), 8))
    B_pad = _round_up(B, TM)
    num_tiles = B_pad // TM

    # Flatten + bf16 cast + pad (XLA fuses these into one cheap elementwise op).
    x2d = x.reshape(B, K_IN).astype(jnp.bfloat16)
    x2d = jnp.pad(x2d, ((0, B_pad - B), (0, K_PAD - K_IN)))
    # Weight stays in PyTorch [256, 784] layout -> no transpose; bf16 + K-pad only.
    w_b = jnp.pad(w.astype(jnp.bfloat16), ((0, 0), (0, K_PAD - K_IN)))
    b2d = b.reshape(1, N_OUT).astype(jnp.float32)

    # VMEM budget from actual tile sizes (double-buffered), with 2x headroom,
    # clamped so it also fits v7x (64 MiB/TC) -- v5e/v6e have 128 MiB.
    vmem_bytes = 2 * (
        2 * TM * K_PAD * 2        # x tiles   (bf16, double buffered)
        + 2 * N_OUT * K_PAD * 2   # weight    (bf16)
        + 2 * 1 * N_OUT * 4       # bias      (f32)
        + 2 * TM * N_OUT * 4      # out tiles (f32, double buffered)
    )
    vmem_limit = int(min(64 * 1024 * 1024, max(8 * 1024 * 1024, vmem_bytes)))

    out = pl.pallas_call(
        fc_relu_kernel,
        out_shape=jax.ShapeDtypeStruct((B_pad, N_OUT), jnp.float32),
        grid=(num_tiles,),
        in_specs=[
            pl.BlockSpec((TM, K_PAD), lambda i: (i, 0)),      # batch tile
            pl.BlockSpec((N_OUT, K_PAD), lambda i: (0, 0)),   # resident weight
            pl.BlockSpec((1, N_OUT), lambda i: (0, 0)),       # resident bias
        ],
        out_specs=pl.BlockSpec((TM, N_OUT), lambda i: (i, 0)),
        compiler_params=pltpu.CompilerParams(
            dimension_semantics=("parallel",),   # batch tiles shard across TCs (v7x)
            vmem_limit_bytes=vmem_limit,
        ),
    )(x2d, w_b, b2d)

    return out[:B]


def init_params(key):
    """Deterministic init matching nn.Linear(784, 256) default init."""
    k_w, k_b = jax.random.split(key)
    bound = 1.0 / math.sqrt(784.0)
    w = jax.random.uniform(k_w, (256, 784), jnp.float32, -bound, bound)
    b = jax.random.uniform(k_b, (256,), jnp.float32, -bound, bound)
    return w, b


if __name__ == "__main__":
    key = jax.random.PRNGKey(0)
    k_x, k_p = jax.random.split(key)

    # Small batch, FashionMNIST-shaped input (B, 1, 28, 28) -> flattens to 784.
    B = 2
    x = jax.random.normal(k_x, (B, 1, 28, 28), jnp.float32)
    w, b = init_params(k_p)

    out = fashion_mnist_cnn_forward(x, w, b)
    out = jax.block_until_ready(out)

    # Sanity check vs plain-JAX f32 reference (loose tol: kernel uses bf16 operands
    # with f32 accumulation).
    ref = jnp.maximum(x.reshape(B, K_IN) @ w.T + b, 0.0)
    assert out.shape == (B, N_OUT)
    assert jnp.allclose(out, ref, atol=5e-2, rtol=5e-2), float(
        jnp.max(jnp.abs(out - ref))
    )

    print("KERNEL_OK")
</pallas_src>

<mosaic_0001>
module attributes {stable_mosaic.version = 11 : i64} {
  func.func @fc_relu_kernel(%arg0: i32, %arg1: memref<8x896xbf16, #tpu.memory_space<vmem>>, %arg2: memref<256x896xbf16, #tpu.memory_space<vmem>>, %arg3: memref<1x256xf32, #tpu.memory_space<vmem>>, %arg4: memref<8x256xf32, #tpu.memory_space<vmem>>) attributes {dimension_semantics = [#tpu.dimension_semantics<parallel>], iteration_bounds = array<i64: 1>, scalar_prefetch = 0 : i64, scratch_operands = 0 : i64, tpu.core_type = #tpu.core_type<tc>, window_params = [{transform_indices = @transform_0, window_bounds = array<i64: 8, 896>}, {pipeline_mode = #tpu.pipeline_mode<synchronous>, transform_indices = @transform_1, window_bounds = array<i64: 256, 896>}, {pipeline_mode = #tpu.pipeline_mode<synchronous>, transform_indices = @transform_2, window_bounds = array<i64: 1, 256>}, {transform_indices = @transform_3, window_bounds = array<i64: 8, 256>}]} {
    %c0 = arith.constant 0 : index
    %c0_0 = arith.constant 0 : index
    %0 = vector.load %arg1[%c0, %c0_0] : memref<8x896xbf16, #tpu.memory_space<vmem>>, vector<8x896xbf16>
    %c0_1 = arith.constant 0 : index
    %c0_2 = arith.constant 0 : index
    %1 = vector.load %arg2[%c0_1, %c0_2] : memref<256x896xbf16, #tpu.memory_space<vmem>>, vector<256x896xbf16>
    %cst = arith.constant dense<0.000000e+00> : vector<8x256xf32>
    %2 = tpu.matmul %0, %1, %cst {dimension_numbers = #tpu.dot_dimension_numbers<[1], [1], [0], [0], [0, 0, 1, 0], [], []>} : vector<8x896xbf16>, vector<256x896xbf16>, vector<8x256xf32> -> vector<8x256xf32>
    %c0_3 = arith.constant 0 : index
    %c0_4 = arith.constant 0 : index
    %3 = vector.load %arg3[%c0_3, %c0_4] : memref<1x256xf32, #tpu.memory_space<vmem>>, vector<1x256xf32>
    %4 = vector.broadcast %3 : vector<1x256xf32> to vector<8x256xf32>
    %5 = arith.addf %2, %4 : vector<8x256xf32>
    %cst_5 = arith.constant 0.000000e+00 : f32
    %6 = vector.broadcast %cst_5 : f32 to vector<8x256xf32>
    %7 = arith.maximumf %5, %6 : vector<8x256xf32>
    %c0_6 = arith.constant 0 : index
    %c0_7 = arith.constant 0 : index
    %8 = vector.load %arg4[%c0_6, %c0_7] : memref<8x256xf32, #tpu.memory_space<vmem>>, vector<8x256xf32>
    tpu.vector_store %arg4[%c0_6, %c0_7], %7 {strides = array<i32>} : memref<8x256xf32, #tpu.memory_space<vmem>>, vector<8x256xf32>,
    return
  }
  func.func @transform_0(%arg0: i32) -> (i32, i32) {
    %c0_i32 = arith.constant 0 : i32
    %c0_i32_0 = arith.constant 0 : i32
    return %arg0, %c0_i32 : i32, i32
  }
  func.func @transform_1(%arg0: i32) -> (i32, i32) {
    %c0_i32 = arith.constant 0 : i32
    %c0_i32_0 = arith.constant 0 : i32
    %c0_i32_1 = arith.constant 0 : i32
    return %c0_i32, %c0_i32_0 : i32, i32
  }
  func.func @transform_2(%arg0: i32) -> (i32, i32) {
    %c0_i32 = arith.constant 0 : i32
    %c0_i32_0 = arith.constant 0 : i32
    %c0_i32_1 = arith.constant 0 : i32
    return %c0_i32, %c0_i32_0 : i32, i32
  }
  func.func @transform_3(%arg0: i32) -> (i32, i32) {
    %c0_i32 = arith.constant 0 : i32
    %c0_i32_0 = arith.constant 0 : i32
    return %arg0, %c0_i32 : i32, i32
  }
}

</mosaic_0001>

<bundles_post_ra>
// kernel: tpu_custom_call.1
= control target key start
LH: loop header
LB: loop body
LE: loop exit
PB: predicated region body
PF: predicated region fallthrough
CT: control target
= control target key end

     0   :  { %8 = vsyncpa [#allocation3], 0  ;;  %s1735_s0 = inlined_call_operand.hbm [shape: bf16[8,896], index: 0, kind: input, shape index: {}]   ;;  %s1736_s1 = inlined_call_operand.hbm [shape: bf16[256,896], index: 1, kind: input, shape index: {}]   ;;  %s1737_s2 = inlined_call_operand.hbm [shape: f32[1,256], index: 2, kind: input, shape index: {}]   ;;  %s1738_s3 = inlined_call_operand.hbm [shape: f32[8,256], index: 3, kind: output, shape index: {}]  }
   0x1   :  { %9 = vsyncpa [#allocation6], 0  ;;  %s26_s14 = sshll.u32 %s1736_s1, 4  ;;  %s27_s14 = int_to_ptr.hbm [resolvable:$true] %s26_s14 }
   0x2   :  { %10 = vsyncpa [#allocation4], 0  ;;  %s1669_s15 = smov [#allocation5]   ;;  %s16_s19 = sshll.u32 %s1735_s0, 4  ;;  %s17_s19 = int_to_ptr.hbm [resolvable:$true] %s16_s19 }
   0x3   :  { %s28_s16 = sshll.u32 %s1669_s15, 4  ;;  %s1670_s20 = smov 448   ;;  %s29_s16 = int_to_ptr.vmem [resolvable:$true] %s28_s16 }
   0x4   :  { %s1671_s21 = smov 28   ;;  %s1672_s22 = smov [#allocation2]  }
   0x5   :  { %34 = dma.hbm_to_vmem [thread:$0]  %s27_s14, 14336, %s29_s16, [#allocation6], %s1670_s20, %s1670_s20, %s1671_s21  }
   0x6   :  { %s18_s23 = sshll.u32 %s1672_s22, 4  ;;  %s40_s26 = sshll.u32 %s1737_s2, 4  ;;  %s19_s23 = int_to_ptr.vmem [resolvable:$true] %s18_s23  ;;  %s41_s26 = int_to_ptr.hbm [resolvable:$true] %s40_s26 }
   0x7   :  { %21 = dma.hbm_to_vmem [thread:$0]  %s17_s19, 448, %s19_s23, [#allocation3]  }
   0x8   :  { %s1673_s1 = smov [#allocation7]  }
   0x9   :  { %s42_s27 = sshll.u32 %s1673_s1, 4  ;;  %s43_s27 = int_to_ptr.vmem [resolvable:$true] %s42_s27 }
   0xa   :  { %45 = dma.hbm_to_vmem [thread:$0]  %s41_s26, 32, %s43_s27, [#allocation6]  }
   0xb   :  { %1663 = dma.done.wait [#allocation3], 448  }
   0xc   :  { %1664 = vsyncadd [#allocation3], 4294966848 }
   0xd   :  { %1665 = dma.done.wait [#allocation6], 14368  }
   0xe   :  { %1666 = vsyncadd [#allocation6], 4294952928  ;;  %v1199_v0 = vld [vmem:[#allocation5 + $0x188] sm:$0xf]  ;;  %v1501_v1 = vld [vmem:[#allocation5 + $0x1a0] sm:$0xf0] }
   0xf   :  { %v1498_v2 = vld [vmem:[#allocation5 + $0x18c] sm:$0xf]  ;;  %v1200_v3 = vor.u32 %v1501_v1, %v1199_v0  ;;  %v1201_v4 = vld [vmem:[#allocation5 + $0x1a4] sm:$0xf0]  ;;  %v1207_v5 = vld [vmem:[#allocation5 + $0x190] sm:$0xf] }
  0x10   :  { %v1502_v6 = vld [vmem:[#allocation5 + $0x1a8] sm:$0xf0]  ;;  %v1204_v7 = vor.u32 %v1498_v2, %v1201_v4  ;;  %v1171_v9 = vld [vmem:[#allocation5 + $0x150] sm:$0xf]  ;;  %v1491_v11 = vld [vmem:[#allocation5 + $0x154] sm:$0xf] }
  0x11   :  { %v1208_v8 = vor.u32 %v1502_v6, %v1207_v5  ;;  %797 = vmatpush.bf16.xpose.msra.mxu0 %v1200_v3  ;;  %v1494_v10 = vld [vmem:[#allocation5 + $0x168] sm:$0xf0]  ;;  %v1173_v12 = vld [vmem:[#allocation5 + $0x16c] sm:$0xf0]  ;;  %v1179_v13 = vld [vmem:[#allocation5 + $0x158] sm:$0xf] }
  0x12   :  { %810 = vmatpush.bf16.xpose.msra.mxu1 %v1204_v7  ;;  %v1495_v14 = vld [vmem:[#allocation5 + $0x170] sm:$0xf0]  ;;  %v1172_v15 = vor.u32 %v1494_v10, %v1171_v9  ;;  %v1176_v16 = vor.u32 %v1491_v11, %v1173_v12  ;;  %v1209_v19 = vld [vmem:[#allocation5 + $0x1ac] sm:$0xf0]  ;;  %v1143_v21 = vld [vmem:[#allocation5 + $0x118] sm:$0xf] }
  0x13   :  { %823 = vmatpush.bf16.xpose.msra.mxu2 %v1208_v8  ;;  %v1180_v17 = vor.u32 %v1495_v14, %v1179_v13  ;;  %v1499_v18 = vld [vmem:[#allocation5 + $0x194] sm:$0xf]  ;;  %v1484_v23 = vld [vmem:[#allocation5 + $0x11c] sm:$0xf]  ;;  %v1145_v24 = vld [vmem:[#allocation5 + $0x134] sm:$0xf0] }
  0x14   :  { %v1212_v20 = vor.u32 %v1499_v18, %v1209_v19  ;;  %v1487_v22 = vld [vmem:[#allocation5 + $0x130] sm:$0xf0]  ;;  %v1151_v25 = vld [vmem:[#allocation5 + $0x120] sm:$0xf]  ;;  %v1488_v26 = vld [vmem:[#allocation5 + $0x138] sm:$0xf0]  ;;  %v1148_v30 = vor.u32 %v1484_v23, %v1145_v24 }
  0x15   :  { %v1492_v27 = vld [vmem:[#allocation5 + $0x15c] sm:$0xf]  ;;  %v1181_v28 = vld [vmem:[#allocation5 + $0x174] sm:$0xf0]  ;;  %v1144_v29 = vor.u32 %v1487_v22, %v1143_v21  ;;  %v1152_v31 = vor.u32 %v1488_v26, %v1151_v25  ;;  %v1115_v33 = vld [vmem:[#allocation5 + $0xe0] sm:$0xf] }
  0x16   :  { %836 = vmatpush.bf16.xpose.msra.mxu3 %v1212_v20  ;;  %v1184_v32 = vor.u32 %v1492_v27, %v1181_v28  ;;  %v1480_v34 = vld [vmem:[#allocation5 + $0xf8] sm:$0xf0]  ;;  %v1477_v35 = vld [vmem:[#allocation5 + $0xe4] sm:$0xf]  ;;  %v1117_v36 = vld [vmem:[#allocation5 + $0xfc] sm:$0xf0] }
  0x17   :  { %v1123_v37 = vld [vmem:[#allocation5 + $0xe8] sm:$0xf]  ;;  %v1481_v38 = vld [vmem:[#allocation5 + $0x100] sm:$0xf0]  ;;  %v1153_v40 = vld [vmem:[#allocation5 + $0x13c] sm:$0xf0]  ;;  %v1116_v41 = vor.u32 %v1480_v34, %v1115_v33  ;;  %v1120_v42 = vor.u32 %v1477_v35, %v1117_v36 }
  0x18   :  { %v1485_v39 = vld [vmem:[#allocation5 + $0x124] sm:$0xf]  ;;  %v1124_v43 = vor.u32 %v1481_v38, %v1123_v37  ;;  %v1087_v45 = vld [vmem:[#allocation5 + $0xa8] sm:$0xf]  ;;  %v1470_v47 = vld [vmem:[#allocation5 + $0xac] sm:$0xf] }
  0x19   :  { %798 = vmatpush.bf16.xpose.msra.mxu0 %v1172_v15  ;;  %v1156_v44 = vor.u32 %v1485_v39, %v1153_v40  ;;  %v1473_v46 = vld [vmem:[#allocation5 + $0xc0] sm:$0xf0]  ;;  %v1089_v48 = vld [vmem:[#allocation5 + $0xc4] sm:$0xf0]  ;;  %v1095_v49 = vld [vmem:[#allocation5 + $0xb0] sm:$0xf] }
  0x1a   :  { %811 = vmatpush.bf16.xpose.msra.mxu1 %v1176_v16  ;;  %v1474_v50 = vld [vmem:[#allocation5 + $0xc8] sm:$0xf0]  ;;  %v1125_v52 = vld [vmem:[#allocation5 + $0x104] sm:$0xf0]  ;;  %v1088_v53 = vor.u32 %v1473_v46, %v1087_v45  ;;  %v1092_v54 = vor.u32 %v1470_v47, %v1089_v48  ;;  %v1059_v57 = vld [vmem:[#allocation5 + $0x70] sm:$0xf] }
  0x1b   :  { %824 = vmatpush.bf16.xpose.msra.mxu2 %v1180_v17  ;;  %v1478_v51 = vld [vmem:[#allocation5 + $0xec] sm:$0xf]  ;;  %v1096_v55 = vor.u32 %v1474_v50, %v1095_v49  ;;  %v1463_v59 = vld [vmem:[#allocation5 + $0x74] sm:$0xf]  ;;  %v1061_v60 = vld [vmem:[#allocation5 + $0x8c] sm:$0xf0] }
  0x1c   :  { %v1128_v56 = vor.u32 %v1478_v51, %v1125_v52  ;;  %v1466_v58 = vld [vmem:[#allocation5 + $0x88] sm:$0xf0]  ;;  %v1067_v61 = vld [vmem:[#allocation5 + $0x78] sm:$0xf]  ;;  %v1467_v62 = vld [vmem:[#allocation5 + $0x90] sm:$0xf0]  ;;  %v1064_v2 = vor.u32 %v1463_v59, %v1061_v60 }
  0x1d   :  { %v1471_v63 = vld [vmem:[#allocation5 + $0xb4] sm:$0xf]  ;;  %v1097_v0 = vld [vmem:[#allocation5 + $0xcc] sm:$0xf0]  ;;  %v1060_v1 = vor.u32 %v1466_v58, %v1059_v57  ;;  %v1068_v3 = vor.u32 %v1467_v62, %v1067_v61  ;;  %v1031_v5 = vld [vmem:[#allocation5 + $0x38] sm:$0xf] }
  0x1e   :  { %837 = vmatpush.bf16.xpose.msra.mxu3 %v1184_v32  ;;  %v1100_v4 = vor.u32 %v1471_v63, %v1097_v0  ;;  %v1459_v6 = vld [vmem:[#allocation5 + $0x50] sm:$0xf0]  ;;  %v1456_v7 = vld [vmem:[#allocation5 + $0x3c] sm:$0xf]  ;;  %v1033_v8 = vld [vmem:[#allocation5 + $0x54] sm:$0xf0] }
  0x1f   :  { %v1039_v9 = vld [vmem:[#allocation5 + $0x40] sm:$0xf]  ;;  %v1460_v10 = vld [vmem:[#allocation5 + $0x58] sm:$0xf0]  ;;  %v1069_v12 = vld [vmem:[#allocation5 + $0x94] sm:$0xf0]  ;;  %v1032_v13 = vor.u32 %v1459_v6, %v1031_v5  ;;  %v1036_v14 = vor.u32 %v1456_v7, %v1033_v8 }
  0x20   :  { %v1464_v11 = vld [vmem:[#allocation5 + $0x7c] sm:$0xf]  ;;  %v1040_v15 = vor.u32 %v1460_v10, %v1039_v9  ;;  %v1003_v17 = vld [vmem:[#allocation5] sm:$0xf]  ;;  %v1449_v19 = vld [vmem:[#allocation5 + $0x4] sm:$0xf] }
  0x21   :  { %799 = vmatpush.bf16.xpose.msra.mxu0 %v1144_v29  ;;  %v1072_v16 = vor.u32 %v1464_v11, %v1069_v12  ;;  %v1452_v18 = vld [vmem:[#allocation5 + $0x18] sm:$0xf0]  ;;  %v1005_v20 = vld [vmem:[#allocation5 + $0x1c] sm:$0xf0]  ;;  %v1011_v21 = vld [vmem:[#allocation5 + $0x8] sm:$0xf] }
  0x22   :  { %812 = vmatpush.bf16.xpose.msra.mxu1 %v1148_v30  ;;  %v1453_v22 = vld [vmem:[#allocation5 + $0x20] sm:$0xf0]  ;;  %v1215_v23 = vld [vmem:[#allocation5 + $0x198] sm:$0xf]  ;;  %v1503_v24 = vld [vmem:[#allocation5 + $0x1b0] sm:$0xf0]  ;;  %v1004_v28 = vor.u32 %v1452_v18, %v1003_v17  ;;  %v1008_v32 = vor.u32 %v1449_v19, %v1005_v20 }
  0x23   :  { %825 = vmatpush.bf16.xpose.msra.mxu2 %v1152_v31  ;;  %v1500_v25 = vld [vmem:[#allocation5 + $0x19c] sm:$0xf]  ;;  %v1217_v26 = vld [vmem:[#allocation5 + $0x1b4] sm:$0xf0]  ;;  %v1223_v27 = vld [vmem:[#allocation5 + $0x1a0] sm:$0xf]  ;;  %v1012_v33 = vor.u32 %v1453_v22, %v1011_v21  ;;  %v1216_v34 = vor.u32 %v1503_v24, %v1215_v23 }
  0x24   :  { %v1504_v29 = vld [vmem:[#allocation5 + $0x1b8] sm:$0xf0]  ;;  %v1457_v30 = vld [vmem:[#allocation5 + $0x44] sm:$0xf]  ;;  %v1041_v31 = vld [vmem:[#allocation5 + $0x5c] sm:$0xf0]  ;;  %v1220_v35 = vor.u32 %v1500_v25, %v1217_v26 }
  0x25   :  { %v1224_v36 = vor.u32 %v1504_v29, %v1223_v27  ;;  %v1044_v37 = vor.u32 %v1457_v30, %v1041_v31  ;;  %v1187_v38 = vld [vmem:[#allocation5 + $0x160] sm:$0xf]  ;;  %v1496_v39 = vld [vmem:[#allocation5 + $0x178] sm:$0xf0]  ;;  %v1493_v40 = vld [vmem:[#allocation5 + $0x164] sm:$0xf] }
  0x26   :  { %838 = vmatpush.bf16.xpose.msra.mxu3 %v1156_v44  ;;  %v1450_v44 = vld [vmem:[#allocation5 + $0xc] sm:$0xf]  ;;  %v1013_v45 = vld [vmem:[#allocation5 + $0x24] sm:$0xf0]  ;;  %v1557_v47 = vld [vmem:[#allocation5 + $0x360] sm:$0xf0]  ;;  %v1188_v48 = vor.u32 %v1496_v39, %v1187_v38 }
  0x27   :  { %v1423_v46 = vld [vmem:[#allocation5 + $0x348] sm:$0xf]  ;;  %v1016_v51 = vor.u32 %v1450_v44, %v1013_v45  ;;  %v59_v58 = vld [vmem:[#allocation2 + $0x8] sm:$0xff]  ;;  %v1479_v11 = vld [vmem:[#allocation5 + $0xf4] sm:$0xf]  ;;  %s1674_s0 = smov [#allocation8]  }
  0x28   :  { %v1424_v52 = vor.u32 %v1557_v47, %v1423_v46  ;;  %v58_v57 = vld [vmem:[#allocation2] sm:$0xff]  ;;  %v1167_v59 = vld [vmem:[#allocation5 + $0x130] sm:$0xf]  ;;  %v1490_v60 = vld [vmem:[#allocation5 + $0x148] sm:$0xf0]  ;;  %v202_v62 = vunpack.c.l.b16 %v59_v58  ;;  %s988_s2 = sshll.u32 %s1674_s0, 4  ;;  %s989_s2 = int_to_ptr.vmem [resolvable:$true] %s988_s2 }
  0x29   :  { %800 = vmatpush.bf16.xpose.msra.mxu0 %v1116_v41  ;;  %v1189_v41 = vld [vmem:[#allocation5 + $0x17c] sm:$0xf0]  ;;  %v200_v61 = vunpack.c.l.b16 %v58_v57  ;;  %v1395_v63 = vld [vmem:[#allocation5 + $0x310] sm:$0xf]  ;;  %v1550_v0 = vld [vmem:[#allocation5 + $0x328] sm:$0xf0]  ;;  %v1168_v5 = vor.u32 %v1490_v60, %v1167_v59  ;;  %v201_v7 = vunpack.c.h.b16 %v58_v57 }
  0x2a   :  { %813 = vmatpush.bf16.xpose.msra.mxu1 %v1120_v42  ;;  %v1195_v42 = vld [vmem:[#allocation5 + $0x168] sm:$0xf]  ;;  %v1192_v49 = vor.u32 %v1493_v40, %v1189_v41  ;;  %v1396_v6 = vor.u32 %v1550_v0, %v1395_v63  ;;  %v1131_v8 = vld [vmem:[#allocation5 + $0xf0] sm:$0xf]  ;;  %v1482_v10 = vld [vmem:[#allocation5 + $0x108] sm:$0xf0] }
  0x2b   :  { %826 = vmatpush.bf16.xpose.msra.mxu2 %v1124_v43  ;;  %v1497_v43 = vld [vmem:[#allocation5 + $0x180] sm:$0xf0]  ;;  %v1710_v9 = vpack.c.b16 %v201_v7, %v201_v7  ;;  %v1133_v12 = vld [vmem:[#allocation5 + $0x10c] sm:$0xf0]  ;;  %v1367_v17 = vld [vmem:[#allocation5 + $0x2d8] sm:$0xf]  ;;  %v1132_v19 = vor.u32 %v1482_v10, %v1131_v8 }
  0x2c   :  { %v1196_v50 = vor.u32 %v1497_v43, %v1195_v42  ;;  %v1543_v18 = vld [vmem:[#allocation5 + $0x2f0] sm:$0xf0]  ;;  %v1136_v20 = vor.u32 %v1479_v11, %v1133_v12  ;;  %v1103_v23 = vld [vmem:[#allocation5 + $0xb8] sm:$0xf]  ;;  %v1472_v25 = vld [vmem:[#allocation5 + $0xbc] sm:$0xf] }
  0x2d   :  { %v1368_v22 = vor.u32 %v1543_v18, %v1367_v17  ;;  %v1475_v24 = vld [vmem:[#allocation5 + $0xd0] sm:$0xf0]  ;;  %v1105_v26 = vld [vmem:[#allocation5 + $0xd4] sm:$0xf0]  ;;  %v1111_v27 = vld [vmem:[#allocation5 + $0xc0] sm:$0xf] }
  0x2e   :  { %839 = vmatpush.bf16.xpose.msra.mxu3 %v1128_v56  ;;  %v1161_v56 = vld [vmem:[#allocation5 + $0x144] sm:$0xf0]  ;;  %v1104_v29 = vor.u32 %v1475_v24, %v1103_v23  ;;  %v1108_v30 = vor.u32 %v1472_v25, %v1105_v26  ;;  %v1077_v38 = vld [vmem:[#allocation5 + $0x9c] sm:$0xf0]  ;;  %v1469_v40 = vld [vmem:[#allocation5 + $0xa0] sm:$0xf0] }
  0x2f   :  { %v1083_v39 = vld [vmem:[#allocation5 + $0x88] sm:$0xf]  ;;  %v1529_v42 = vld [vmem:[#allocation5 + $0x280] sm:$0xf0]  ;;  %v1019_v59 = vld [vmem:[#allocation5 + $0x10] sm:$0xf] }
  0x30   :  { %v1311_v41 = vld [vmem:[#allocation5 + $0x268] sm:$0xf]  ;;  %v1084_v45 = vor.u32 %v1469_v40, %v1083_v39  ;;  %v1454_v60 = vld [vmem:[#allocation5 + $0x28] sm:$0xf0]  ;;  %v1027_v63 = vld [vmem:[#allocation5 + $0x18] sm:$0xf] }
  0x31   :  { %801 = vmatpush.bf16.xpose.msra.mxu0 %v1088_v53  ;;  %v1159_v53 = vld [vmem:[#allocation5 + $0x128] sm:$0xf]  ;;  %v1312_v46 = vor.u32 %v1529_v42, %v1311_v41  ;;  %v1455_v0 = vld [vmem:[#allocation5 + $0x30] sm:$0xf0]  ;;  %v1255_v7 = vld [vmem:[#allocation5 + $0x1f8] sm:$0xf]  ;;  %v1020_v10 = vor.u32 %v1454_v60, %v1019_v59 }
  0x32   :  { %814 = vmatpush.bf16.xpose.msra.mxu1 %v1092_v54  ;;  %v1489_v54 = vld [vmem:[#allocation5 + $0x140] sm:$0xf0]  ;;  %v1047_v47 = vld [vmem:[#allocation5 + $0x48] sm:$0xf]  ;;  %v1515_v8 = vld [vmem:[#allocation5 + $0x210] sm:$0xf0] }
  0x33   :  { %827 = vmatpush.bf16.xpose.msra.mxu2 %v1096_v55  ;;  %v1486_v55 = vld [vmem:[#allocation5 + $0x12c] sm:$0xf]  ;;  %v60_v12 = vld [vmem:[#allocation2 + $0x10] sm:$0xff]  ;;  %v1256_v18 = vor.u32 %v1515_v8, %v1255_v7  ;;  %v1397_v23 = vld [vmem:[#allocation5 + $0x32c] sm:$0xf0]  ;;  %s990_s30 = sshll.u32 %s1738_s3, 4  ;;  %s991_s30 = int_to_ptr.hbm [resolvable:$true] %s990_s30 }
  0x34   :  { %v1403_v24 = vld [vmem:[#allocation5 + $0x318] sm:$0xf]  ;;  %v1555_v25 = vld [vmem:[#allocation5 + $0x354] sm:$0xf]  ;;  %v1433_v26 = vld [vmem:[#allocation5 + $0x36c] sm:$0xf0] }
  0x35   :  { %v1540_v40 = vld [vmem:[#allocation5 + $0x2dc] sm:$0xf]  ;;  %v1369_v41 = vld [vmem:[#allocation5 + $0x2f4] sm:$0xf0]  ;;  %v1383_v59 = vld [vmem:[#allocation5 + $0x2e8] sm:$0xf] }
  0x36   :  { %840 = vmatpush.bf16.xpose.msra.mxu3 %v1100_v4  ;;  %v1706_v4 = vpack.c.b16 %v202_v62, %v202_v62  ;;  %v1021_v62 = vld [vmem:[#allocation5 + $0x2c] sm:$0xf0]  ;;  %v1548_v42 = vld [vmem:[#allocation5 + $0x31c] sm:$0xf]  ;;  %v1545_v60 = vld [vmem:[#allocation5 + $0x300] sm:$0xf0] }
  0x37   :  { %v1355_v8 = vld [vmem:[#allocation5 + $0x2b0] sm:$0xf] }
  0x39   :  { %802 = vmatpush.bf16.xpose.msra.mxu0 %v1060_v1  ;;  %v1160_v1 = vor.u32 %v1489_v54, %v1159_v53  ;;  %v1283_v53 = vld [vmem:[#allocation5 + $0x230] sm:$0xf]  ;;  %v1522_v54 = vld [vmem:[#allocation5 + $0x248] sm:$0xf0] }
  0x3a   :  { %815 = vmatpush.bf16.xpose.msra.mxu1 %v1064_v2  ;;  %v1164_v2 = vor.u32 %v1486_v55, %v1161_v56 }
  0x3b   :  { %828 = vmatpush.bf16.xpose.msra.mxu2 %v1068_v3  ;;  %v1704_v3 = vpack.c.b16 %v200_v61, %v200_v61  ;;  %v1451_v61 = vld [vmem:[#allocation5 + $0x14] sm:$0xf] }
  0x3c   :  { %v1024_v11 = vor.u32 %v1451_v61, %v1021_v62 }
  0x3e   :  { %841 = vmatpush.bf16.xpose.msra.mxu3 %v1072_v16 }
  0x41   :  { %803 = vmatpush.bf16.xpose.msra.mxu0 %v1032_v13  ;;  %v203_v13 = vunpack.c.h.b16 %v59_v58  ;;  %v1284_v58 = vor.u32 %v1522_v54, %v1283_v53  ;;  %v1341_v53 = vld [vmem:[#allocation5 + $0x2bc] sm:$0xf0]  ;;  %v1541_v54 = vld [vmem:[#allocation5 + $0x2e4] sm:$0xf] }
  0x42   :  { %816 = vmatpush.bf16.xpose.msra.mxu1 %v1036_v14  ;;  %v1139_v14 = vld [vmem:[#allocation5 + $0xf8] sm:$0xf] }
  0x43   :  { %829 = vmatpush.bf16.xpose.msra.mxu2 %v1040_v15  ;;  %v1483_v15 = vld [vmem:[#allocation5 + $0x110] sm:$0xf0]  ;;  %v1713_v16 = vpack.c.b16 %v203_v13, %v203_v13  ;;  %v1028_v13 = vor.u32 %v1455_v0, %v1027_v63  ;;  %v1384_v63 = vor.u32 %v1545_v60, %v1383_v59  ;;  %v1526_v0 = vld [vmem:[#allocation5 + $0x26c] sm:$0xf]  ;;  %v1549_v60 = vld [vmem:[#allocation5 + $0x324] sm:$0xf] }
  0x44   :  { %v1140_v21 = vor.u32 %v1483_v15, %v1139_v14  ;;  %v61_v15 = vld [vmem:[#allocation2 + $0x18] sm:$0xf] }
  0x46   :  { %842 = vmatpush.bf16.xpose.msra.mxu3 %v1044_v37  ;;  %v1465_v37 = vld [vmem:[#allocation5 + $0x84] sm:$0xf] }
  0x47   :  { %v1080_v44 = vor.u32 %v1465_v37, %v1077_v38 }
  0x49   :  { %804 = vmatpush.bf16.xpose.msra.mxu0 %v1004_v28  ;;  %v1476_v28 = vld [vmem:[#allocation5 + $0xd8] sm:$0xf0] }
  0x4a   :  { %817 = vmatpush.bf16.xpose.msra.mxu1 %v1008_v32  ;;  %v1112_v31 = vor.u32 %v1476_v28, %v1111_v27  ;;  %v1339_v32 = vld [vmem:[#allocation5 + $0x2a0] sm:$0xf] }
  0x4b   :  { %830 = vmatpush.bf16.xpose.msra.mxu2 %v1012_v33  ;;  %v1536_v33 = vld [vmem:[#allocation5 + $0x2b8] sm:$0xf0] }
  0x4e   :  { %843 = vmatpush.bf16.xpose.msra.mxu3 %v1016_v51  ;;  %v1055_v51 = vld [vmem:[#allocation5 + $0x50] sm:$0xf] }
  0x50   :  { %805 = vmatmul.bf16.vlgmr.msra.gmra.mxu0 %v1704_v3 }
  0x51   :  { %849 = vmatpush.bf16.xpose.msrb.mxu0 %v1216_v34  ;;  %818 = vmatmul.bf16.vlgmr.msra.gmra.mxu1 %v1710_v9  ;;  %v1340_v34 = vor.u32 %v1536_v33, %v1339_v32  ;;  %v1508_v32 = vld [vmem:[#allocation5 + $0x1d8] sm:$0xf0] }
  0x52   :  { %862 = vmatpush.bf16.xpose.msrb.mxu1 %v1220_v35  ;;  %831 = vmatmul.bf16.vlgmr.msra.gmra.mxu2 %v1706_v4  ;;  %v1075_v35 = vld [vmem:[#allocation5 + $0x80] sm:$0xf] }
  0x53   :  { %875 = vmatpush.bf16.xpose.msrb.mxu2 %v1224_v36  ;;  %v1468_v36 = vld [vmem:[#allocation5 + $0x98] sm:$0xf0] }
  0x54   :  { %v1076_v43 = vor.u32 %v1468_v36, %v1075_v35  ;;  %v1559_v35 = vld [vmem:[#allocation5 + $0x370] sm:$0xf0] }
  0x55   :  { %844 = vmatmul.bf16.vlgmr.msra.gmra.mxu3 %v1713_v16 }
  0x56   :  { %888 = vmatpush.bf16.xpose.msrb.mxu3 %v1424_v52  ;;  %v1462_v52 = vld [vmem:[#allocation5 + $0x68] sm:$0xf0] }
  0x57   :  { %v1056_v57 = vor.u32 %v1462_v52, %v1055_v51  ;;  %v1533_v52 = vld [vmem:[#allocation5 + $0x2a4] sm:$0xf] }
  0x58   :  { %v1344_v61 = vor.u32 %v1533_v52, %v1341_v53  ;;  %v1271_v53 = vld [vmem:[#allocation5 + $0x208] sm:$0xf] }
  0x59   :  { %850 = vmatpush.bf16.xpose.msrb.mxu0 %v1188_v48  ;;  %v1461_v48 = vld [vmem:[#allocation5 + $0x60] sm:$0xf0] }
  0x5a   :  { %863 = vmatpush.bf16.xpose.msrb.mxu1 %v1192_v49  ;;  %v1458_v49 = vld [vmem:[#allocation5 + $0x4c] sm:$0xf]  ;;  %v1048_v55 = vor.u32 %v1461_v48, %v1047_v47  ;;  %v1411_v47 = vld [vmem:[#allocation5 + $0x320] sm:$0xf]  ;;  %v1552_v48 = vld [vmem:[#allocation5 + $0x338] sm:$0xf0] }
  0x5b   :  { %876 = vmatpush.bf16.xpose.msrb.mxu2 %v1196_v50  ;;  %v1049_v50 = vld [vmem:[#allocation5 + $0x64] sm:$0xf0]  ;;  %v1412_v51 = vor.u32 %v1552_v48, %v1411_v47  ;;  %v1441_v47 = vld [vmem:[#allocation5 + $0x374] sm:$0xf0]  ;;  %v1447_v48 = vld [vmem:[#allocation5 + $0x360] sm:$0xf] }
  0x5c   :  { %v1052_v56 = vor.u32 %v1458_v49, %v1049_v50  ;;  %v1372_v49 = vor.u32 %v1540_v40, %v1369_v41 }
  0x5e   :  { %889 = vmatpush.bf16.xpose.msrb.mxu3 %v1396_v6  ;;  %v1558_v6 = vld [vmem:[#allocation5 + $0x368] sm:$0xf0] }
  0x61   :  { %851 = vmatpush.bf16.xpose.msrb.mxu0 %v1160_v1  ;;  %v1554_v1 = vld [vmem:[#allocation5 + $0x34c] sm:$0xf] }
  0x62   :  { %864 = vmatpush.bf16.xpose.msrb.mxu1 %v1164_v2  ;;  %v1425_v2 = vld [vmem:[#allocation5 + $0x364] sm:$0xf0] }
  0x63   :  { %877 = vmatpush.bf16.xpose.msrb.mxu2 %v1168_v5  ;;  %v1431_v5 = vld [vmem:[#allocation5 + $0x350] sm:$0xf]  ;;  %v1428_v14 = vor.u32 %v1554_v1, %v1425_v2  ;;  %v1313_v1 = vld [vmem:[#allocation5 + $0x284] sm:$0xf0] }
  0x64   :  { %v1432_v17 = vor.u32 %v1558_v6, %v1431_v5  ;;  %v1319_v2 = vld [vmem:[#allocation5 + $0x270] sm:$0xf]  ;;  %v1534_v5 = vld [vmem:[#allocation5 + $0x2ac] sm:$0xf]  ;;  %v1349_v6 = vld [vmem:[#allocation5 + $0x2c4] sm:$0xf0] }
  0x65   :  { %v1352_v7 = vor.u32 %v1534_v5, %v1349_v6  ;;  %v1510_v5 = vld [vmem:[#allocation5 + $0x1e8] sm:$0xf0] }
  0x66   :  { %890 = vmatpush.bf16.xpose.msrb.mxu3 %v1368_v22  ;;  %v1547_v22 = vld [vmem:[#allocation5 + $0x314] sm:$0xf] }
  0x67   :  { %v1400_v36 = vor.u32 %v1547_v22, %v1397_v23  ;;  %v1327_v22 = vld [vmem:[#allocation5 + $0x278] sm:$0xf]  ;;  %v1531_v23 = vld [vmem:[#allocation5 + $0x290] sm:$0xf0] }
  0x69   :  { %852 = vmatpush.bf16.xpose.msrb.mxu0 %v1132_v19  ;;  %v204_v19 = vunpack.c.l.b16 %v60_v12 }
  0x6a   :  { %865 = vmatpush.bf16.xpose.msrb.mxu1 %v1136_v20  ;;  %v205_v20 = vunpack.c.h.b16 %v60_v12 }
  0x6b   :  { %878 = vmatpush.bf16.xpose.msrb.mxu2 %v1140_v21  ;;  %v206_v21 = vunpack.c.l.b16 %v61_v15  ;;  %v1716_v27 = vpack.c.b16 %v204_v19, %v204_v19  ;;  %v1285_v15 = vld [vmem:[#allocation5 + $0x24c] sm:$0xf0]  ;;  %v1527_v19 = vld [vmem:[#allocation5 + $0x274] sm:$0xf] }
  0x6c   :  { %v1718_v28 = vpack.c.b16 %v205_v20, %v205_v20  ;;  %v1321_v20 = vld [vmem:[#allocation5 + $0x28c] sm:$0xf0] }
  0x6d   :  { %v1720_v33 = vpack.c.b16 %v206_v21, %v206_v21  ;;  %v1324_v21 = vor.u32 %v1527_v19, %v1321_v20  ;;  %v1539_v19 = vld [vmem:[#allocation5 + $0x2d0] sm:$0xf0] }
  0x6e   :  { %891 = vmatpush.bf16.xpose.msrb.mxu3 %v1340_v34  ;;  %v1439_v34 = vld [vmem:[#allocation5 + $0x358] sm:$0xf] }
  0x6f   :  { %v1440_v39 = vor.u32 %v1559_v35, %v1439_v34  ;;  %v1520_v34 = vld [vmem:[#allocation5 + $0x23c] sm:$0xf]  ;;  %v1293_v35 = vld [vmem:[#allocation5 + $0x254] sm:$0xf0] }
  0x71   :  { %853 = vmatpush.bf16.xpose.msrb.mxu0 %v1104_v29  ;;  %v1551_v29 = vld [vmem:[#allocation5 + $0x330] sm:$0xf0] }
  0x72   :  { %866 = vmatpush.bf16.xpose.msrb.mxu1 %v1108_v30  ;;  %v1436_v30 = vor.u32 %v1555_v25, %v1433_v26  ;;  %v1404_v37 = vor.u32 %v1551_v29, %v1403_v24  ;;  %v1328_v26 = vor.u32 %v1531_v23, %v1327_v22  ;;  %v1512_v29 = vld [vmem:[#allocation5 + $0x1fc] sm:$0xf]  ;;  %v1329_v22 = vld [vmem:[#allocation5 + $0x294] sm:$0xf0] }
  0x73   :  { %879 = vmatpush.bf16.xpose.msrb.mxu2 %v1112_v31  ;;  %v1227_v31 = vld [vmem:[#allocation5 + $0x1c0] sm:$0xf] }
  0x74   :  { %v1228_v38 = vor.u32 %v1508_v32, %v1227_v31  ;;  %v1263_v31 = vld [vmem:[#allocation5 + $0x200] sm:$0xf]  ;;  %v1516_v32 = vld [vmem:[#allocation5 + $0x218] sm:$0xf0] }
  0x75   :  { %v1264_v40 = vor.u32 %v1516_v32, %v1263_v31  ;;  %v1301_v31 = vld [vmem:[#allocation5 + $0x25c] sm:$0xf0] }
  0x76   :  { %892 = vmatpush.bf16.xpose.msrb.mxu3 %v1312_v46 }
  0x79   :  { %854 = vmatpush.bf16.xpose.msrb.mxu0 %v1076_v43  ;;  %v1405_v43 = vld [vmem:[#allocation5 + $0x334] sm:$0xf0] }
  0x7a   :  { %867 = vmatpush.bf16.xpose.msrb.mxu1 %v1080_v44  ;;  %v1375_v44 = vld [vmem:[#allocation5 + $0x2e0] sm:$0xf]  ;;  %v1408_v46 = vor.u32 %v1548_v42, %v1405_v43  ;;  %v1505_v42 = vld [vmem:[#allocation5 + $0x1c4] sm:$0xf] }
  0x7b   :  { %880 = vmatpush.bf16.xpose.msrb.mxu2 %v1084_v45  ;;  %v1544_v45 = vld [vmem:[#allocation5 + $0x2f8] sm:$0xf0]  ;;  %v1229_v43 = vld [vmem:[#allocation5 + $0x1dc] sm:$0xf0] }
  0x7c   :  { %v1376_v50 = vor.u32 %v1544_v45, %v1375_v44  ;;  %v1235_v44 = vld [vmem:[#allocation5 + $0x1c8] sm:$0xf]  ;;  %v1509_v45 = vld [vmem:[#allocation5 + $0x1e0] sm:$0xf0] }
  0x7e   :  { %893 = vmatpush.bf16.xpose.msrb.mxu3 %v1284_v58 }
  0x81   :  { %855 = vmatpush.bf16.xpose.msrb.mxu0 %v1048_v55  ;;  %v1377_v55 = vld [vmem:[#allocation5 + $0x2fc] sm:$0xf0] }
  0x82   :  { %868 = vmatpush.bf16.xpose.msrb.mxu1 %v1052_v56  ;;  %v1347_v56 = vld [vmem:[#allocation5 + $0x2a8] sm:$0xf]  ;;  %v1380_v58 = vor.u32 %v1541_v54, %v1377_v55  ;;  %v1517_v54 = vld [vmem:[#allocation5 + $0x220] sm:$0xf0]  ;;  %v1232_v55 = vor.u32 %v1505_v42, %v1229_v43  ;;  %v1279_v43 = vld [vmem:[#allocation5 + $0x210] sm:$0xf] }
  0x83   :  { %881 = vmatpush.bf16.xpose.msrb.mxu2 %v1056_v57  ;;  %v1537_v57 = vld [vmem:[#allocation5 + $0x2c0] sm:$0xf0]  ;;  %v1272_v59 = vor.u32 %v1517_v54, %v1271_v53  ;;  %v1273_v42 = vld [vmem:[#allocation5 + $0x224] sm:$0xf0]  ;;  %v190_v54 = vld [vmem:[#allocation7] sm:$0x3] }
  0x84   :  { %v1348_v62 = vor.u32 %v1537_v57, %v1347_v56  ;;  %v1236_v56 = vor.u32 %v1509_v45, %v1235_v44  ;;  %v1518_v44 = vld [vmem:[#allocation5 + $0x228] sm:$0xf0] }
  0x86   :  { %894 = vmatpush.bf16.xpose.msrb.mxu3 %v1256_v18  ;;  %v1523_v18 = vld [vmem:[#allocation5 + $0x250] sm:$0xf0] }
  0x89   :  { %856 = vmatpush.bf16.xpose.msrb.mxu0 %v1020_v10  ;;  %v1538_v10 = vld [vmem:[#allocation5 + $0x2c8] sm:$0xf0] }
  0x8a   :  { %869 = vmatpush.bf16.xpose.msrb.mxu1 %v1024_v11  ;;  %v1316_v11 = vor.u32 %v1526_v0, %v1313_v1  ;;  %v1237_v0 = vld [vmem:[#allocation5 + $0x1e4] sm:$0xf0]  ;;  %v1553_v1 = vld [vmem:[#allocation5 + $0x340] sm:$0xf0] }
  0x8b   :  { %882 = vmatpush.bf16.xpose.msrb.mxu2 %v1028_v13  ;;  %v1356_v13 = vor.u32 %v1538_v10, %v1355_v8  ;;  %v1542_v10 = vld [vmem:[#allocation5 + $0x2ec] sm:$0xf] }
  0x8e   :  { %895 = vmatpush.bf16.xpose.msrb.mxu3 %v1228_v38  ;;  %v1524_v38 = vld [vmem:[#allocation5 + $0x258] sm:$0xf0] }
  0x90   :  { %857 = vmatmul.bf16.vlgmr.msrb.gmra.mxu0 %v1716_v27 }
  0x91   :  { %901 = vmatpush.bf16.xpose.msra.mxu0 %v1428_v14  ;;  %870 = vmatmul.bf16.vlgmr.msrb.gmra.mxu1 %v1718_v28  ;;  %v1519_v14 = vld [vmem:[#allocation5 + $0x234] sm:$0xf] }
  0x92   :  { %914 = vmatpush.bf16.xpose.msra.mxu1 %v1432_v17  ;;  %883 = vmatmul.bf16.vlgmr.msrb.gmra.mxu2 %v1720_v33  ;;  %v1291_v17 = vld [vmem:[#allocation5 + $0x238] sm:$0xf]  ;;  %v1288_v24 = vor.u32 %v1519_v14, %v1285_v15 }
  0x93   :  { %927 = vmatpush.bf16.xpose.msra.mxu2 %v1436_v30  ;;  %v1292_v25 = vor.u32 %v1523_v18, %v1291_v17  ;;  %v1257_v30 = vld [vmem:[#allocation5 + $0x214] sm:$0xf0]  ;;  %v1535_v17 = vld [vmem:[#allocation5 + $0x2b4] sm:$0xf]  ;;  %v1357_v18 = vld [vmem:[#allocation5 + $0x2cc] sm:$0xf0] }
  0x95   :  { %896 = vmatmul.bf16.vlgmr.msrb.gmra.mxu3 %v1704_v3  ;;  %v1530_v3 = vld [vmem:[#allocation5 + $0x288] sm:$0xf0] }
  0x96   :  { %940 = vmatpush.bf16.xpose.msra.mxu3 %v1440_v39  ;;  %v1320_v12 = vor.u32 %v1530_v3, %v1319_v2  ;;  %v1260_v39 = vor.u32 %v1512_v29, %v1257_v30  ;;  %v1243_v3 = vld [vmem:[#allocation5 + $0x1d0] sm:$0xf] }
  0x97   :  { %v1244_v8 = vor.u32 %v1510_v5, %v1243_v3 }
  0x99   :  { %902 = vmatpush.bf16.xpose.msra.mxu0 %v1400_v36  ;;  %v1296_v36 = vor.u32 %v1520_v34, %v1293_v35  ;;  %v1307_v34 = vld [vmem:[#allocation5 + $0x248] sm:$0xf]  ;;  %v1525_v35 = vld [vmem:[#allocation5 + $0x260] sm:$0xf0] }
  0x9a   :  { %915 = vmatpush.bf16.xpose.msra.mxu1 %v1404_v37  ;;  %v1299_v37 = vld [vmem:[#allocation5 + $0x240] sm:$0xf] }
  0x9b   :  { %928 = vmatpush.bf16.xpose.msra.mxu2 %v1408_v46  ;;  %v1300_v41 = vor.u32 %v1524_v38, %v1299_v37  ;;  %v1556_v46 = vld [vmem:[#allocation5 + $0x35c] sm:$0xf]  ;;  %v1308_v37 = vor.u32 %v1525_v35, %v1307_v34 }
  0x9c   :  { %v1444_v57 = vor.u32 %v1556_v46, %v1441_v47  ;;  %v1280_v46 = vor.u32 %v1518_v44, %v1279_v43 }
  0x9e   :  { %941 = vmatpush.bf16.xpose.msra.mxu3 %v1412_v51  ;;  %v1560_v51 = vld [vmem:[#allocation5 + $0x378] sm:$0xf0] }
  0xa1   :  { %903 = vmatpush.bf16.xpose.msra.mxu0 %v1372_v49  ;;  %v1513_v49 = vld [vmem:[#allocation5 + $0x204] sm:$0xf] }
  0xa2   :  { %916 = vmatpush.bf16.xpose.msra.mxu1 %v1376_v50  ;;  %v1265_v50 = vld [vmem:[#allocation5 + $0x21c] sm:$0xf0] }
  0xa3   :  { %929 = vmatpush.bf16.xpose.msra.mxu2 %v1380_v58  ;;  %v1268_v52 = vor.u32 %v1513_v49, %v1265_v50  ;;  %v1448_v58 = vor.u32 %v1560_v51, %v1447_v48  ;;  %v1507_v48 = vld [vmem:[#allocation5 + $0x1d4] sm:$0xf]  ;;  %v1245_v49 = vld [vmem:[#allocation5 + $0x1ec] sm:$0xf0]  ;;  %v1251_v50 = vld [vmem:[#allocation5 + $0x1d8] sm:$0xf] }
  0xa4   :  { %v1511_v51 = vld [vmem:[#allocation5 + $0x1f0] sm:$0xf0] }
  0xa5   :  { %v1252_v53 = vor.u32 %v1511_v51, %v1251_v50 }
  0xa6   :  { %942 = vmatpush.bf16.xpose.msra.mxu3 %v1384_v63  ;;  %v1506_v63 = vld [vmem:[#allocation5 + $0x1cc] sm:$0xf] }
  0xa7   :  { %v1240_v2 = vor.u32 %v1506_v63, %v1237_v0 }
  0xa9   :  { %904 = vmatpush.bf16.xpose.msra.mxu0 %v1344_v61  ;;  %v1413_v61 = vld [vmem:[#allocation5 + $0x33c] sm:$0xf0] }
  0xaa   :  { %917 = vmatpush.bf16.xpose.msra.mxu1 %v1348_v62  ;;  %v1419_v62 = vld [vmem:[#allocation5 + $0x328] sm:$0xf]  ;;  %v1416_v6 = vor.u32 %v1549_v60, %v1413_v61 }
  0xab   :  { %930 = vmatpush.bf16.xpose.msra.mxu2 %v1352_v7  ;;  %v1420_v7 = vor.u32 %v1553_v1, %v1419_v62 }
  0xae   :  { %943 = vmatpush.bf16.xpose.msra.mxu3 %v1356_v13  ;;  %v1546_v13 = vld [vmem:[#allocation5 + $0x308] sm:$0xf0] }
  0xb1   :  { %905 = vmatpush.bf16.xpose.msra.mxu0 %v1316_v11  ;;  %v1385_v11 = vld [vmem:[#allocation5 + $0x304] sm:$0xf0] }
  0xb2   :  { %918 = vmatpush.bf16.xpose.msra.mxu1 %v1320_v12  ;;  %v1391_v12 = vld [vmem:[#allocation5 + $0x2f0] sm:$0xf]  ;;  %v1388_v14 = vor.u32 %v1542_v10, %v1385_v11 }
  0xb3   :  { %931 = vmatpush.bf16.xpose.msra.mxu2 %v1324_v21  ;;  %v1392_v15 = vor.u32 %v1546_v13, %v1391_v12  ;;  %v1528_v21 = vld [vmem:[#allocation5 + $0x27c] sm:$0xf] }
  0xb6   :  { %944 = vmatpush.bf16.xpose.msra.mxu3 %v1328_v26 }
  0xb9   :  { %906 = vmatpush.bf16.xpose.msra.mxu0 %v1288_v24  ;;  %v1335_v24 = vld [vmem:[#allocation5 + $0x280] sm:$0xf] }
  0xba   :  { %919 = vmatpush.bf16.xpose.msra.mxu1 %v1292_v25  ;;  %v1532_v25 = vld [vmem:[#allocation5 + $0x298] sm:$0xf0] }
  0xbb   :  { %932 = vmatpush.bf16.xpose.msra.mxu2 %v1296_v36  ;;  %v1336_v26 = vor.u32 %v1532_v25, %v1335_v24 }
  0xbe   :  { %945 = vmatpush.bf16.xpose.msra.mxu3 %v1300_v41  ;;  %v1514_v41 = vld [vmem:[#allocation5 + $0x20c] sm:$0xf] }
  0xbf   :  { %v1276_v45 = vor.u32 %v1514_v41, %v1273_v42 }
  0xc1   :  { %907 = vmatpush.bf16.xpose.msra.mxu0 %v1260_v39 }
  0xc2   :  { %920 = vmatpush.bf16.xpose.msra.mxu1 %v1264_v40 }
  0xc3   :  { %933 = vmatpush.bf16.xpose.msra.mxu2 %v1268_v52  ;;  %v1248_v52 = vor.u32 %v1507_v48, %v1245_v49 }
  0xc6   :  { %946 = vmatpush.bf16.xpose.msra.mxu3 %v1272_v59 }
  0xc9   :  { %908 = vmatpush.bf16.xpose.msra.mxu0 %v1232_v55  ;;  %v192_v55 = vperm.slane %v190_v54, 0 }
  0xca   :  { %921 = vmatpush.bf16.xpose.msra.mxu1 %v1236_v56 }
  0xcb   :  { %934 = vmatpush.bf16.xpose.msra.mxu2 %v1240_v2 }
  0xcd   :  { %v806_v23 = vpop.f32.mrf.mxu0 }
  0xce   :  { %947 = vmatpush.bf16.xpose.msra.mxu3 %v1244_v8  ;;  %v819_v29 = vpop.f32.mrf.mxu1  ;;  %v807_v56 = vadd.f32 %v806_v23, %v192_v55 }
  0xd0   :  { %909 = vmatmul.bf16.vlgmr.msra.gmra.mxu0 %v1710_v9  ;;  %v1363_v9 = vld [vmem:[#allocation5 + $0x2b8] sm:$0xf] }
  0xd1   :  { %953 = vmatpush.bf16.xpose.msrb.mxu0 %v1444_v57  ;;  %922 = vmatmul.bf16.vlgmr.msra.gmra.mxu1 %v1706_v4  ;;  %v1360_v4 = vor.u32 %v1535_v17, %v1357_v18  ;;  %v1364_v20 = vor.u32 %v1539_v19, %v1363_v9  ;;  %v820_v57 = vadd.f32 %v819_v29, %v807_v56 }
  0xd2   :  { %966 = vmatpush.bf16.xpose.msrb.mxu1 %v1448_v58  ;;  %935 = vmatmul.bf16.vlgmr.msra.gmra.mxu2 %v1713_v16  ;;  %v1332_v16 = vor.u32 %v1528_v21, %v1329_v22 }
  0xd5   :  { %948 = vmatmul.bf16.vlgmr.msra.gmra.mxu3 %v1716_v27  ;;  %v832_v30 = vpop.f32.mrf.mxu2  ;;  %v1521_v27 = vld [vmem:[#allocation5 + $0x244] sm:$0xf]  ;;  %v808_v32 = vpop.f32.mrf.mxu0 }
  0xd6   :  { %v1304_v36 = vor.u32 %v1521_v27, %v1301_v31  ;;  %v821_v38 = vpop.f32.mrf.mxu1  ;;  %v833_v58 = vadd.f32 %v832_v30, %v820_v57 }
  0xd8   :  { %v845_v39 = vpop.f32.mrf.mxu3 }
  0xd9   :  { %954 = vmatpush.bf16.xpose.msrb.mxu0 %v1416_v6  ;;  %v846_v59 = vadd.f32 %v845_v39, %v833_v58  ;;  %v193_v6 = vperm.slane %v190_v54, 1 }
  0xda   :  { %967 = vmatpush.bf16.xpose.msrb.mxu1 %v1420_v7 }
  0xdd   :  { %v834_v40 = vpop.f32.mrf.mxu2 }
  0xe0   :  { %v847_v47 = vpop.f32.mrf.mxu3 }
  0xe1   :  { %955 = vmatpush.bf16.xpose.msrb.mxu0 %v1388_v14 }
  0xe2   :  { %968 = vmatpush.bf16.xpose.msrb.mxu1 %v1392_v15 }
  0xe9   :  { %956 = vmatpush.bf16.xpose.msrb.mxu0 %v1360_v4 }
  0xea   :  { %969 = vmatpush.bf16.xpose.msrb.mxu1 %v1364_v20 }
  0xf1   :  { %957 = vmatpush.bf16.xpose.msrb.mxu0 %v1332_v16 }
  0xf2   :  { %970 = vmatpush.bf16.xpose.msrb.mxu1 %v1336_v26 }
  0xf9   :  { %958 = vmatpush.bf16.xpose.msrb.mxu0 %v1304_v36 }
  0xfa   :  { %971 = vmatpush.bf16.xpose.msrb.mxu1 %v1308_v37 }
 0x101   :  { %959 = vmatpush.bf16.xpose.msrb.mxu0 %v1276_v45 }
 0x102   :  { %972 = vmatpush.bf16.xpose.msrb.mxu1 %v1280_v46 }
 0x109   :  { %960 = vmatpush.bf16.xpose.msrb.mxu0 %v1248_v52 }
 0x10a   :  { %973 = vmatpush.bf16.xpose.msrb.mxu1 %v1252_v53 }
 0x10d   :  { %v858_v60 = vpop.f32.mrf.mxu0 }
 0x10e   :  { %v871_v61 = vpop.f32.mrf.mxu1  ;;  %v859_v62 = vadd.f32 %v858_v60, %v846_v59 }
 0x110   :  { %961 = vmatmul.bf16.vlgmr.msrb.gmra.mxu0 %v1718_v28  ;;  %v872_v63 = vadd.f32 %v871_v61, %v859_v62 }
 0x111   :  { %974 = vmatmul.bf16.vlgmr.msrb.gmra.mxu1 %v1720_v33 }
 0x115   :  { %v884_v0 = vpop.f32.mrf.mxu2  ;;  %v860_v2 = vpop.f32.mrf.mxu0 }
 0x116   :  { %v885_v1 = vadd.f32 %v884_v0, %v872_v63  ;;  %v873_v3 = vpop.f32.mrf.mxu1 }
 0x118   :  { %v979_v5 = vmax.f32 %v885_v1, 0.0  ;;  %v897_v8 = vpop.f32.mrf.mxu3 }
 0x119   :  { %v898_v10 = vadd.f32 %v897_v8, %v193_v6 }
 0x11a   :  { %981 = vst [vmem:[#allocation8] sm:$0xff] %v979_v5 }
 0x11d   :  { %v886_v7 = vpop.f32.mrf.mxu2 }
 0x120   :  { %v899_v28 = vpop.f32.mrf.mxu3 }
 0x14d   :  { %v910_v11 = vpop.f32.mrf.mxu0 }
 0x14e   :  { %v923_v12 = vpop.f32.mrf.mxu1  ;;  %v911_v9 = vadd.f32 %v910_v11, %v898_v10 }
 0x150   :  { %v924_v19 = vadd.f32 %v923_v12, %v911_v9 }
 0x155   :  { %v912_v33 = vpop.f32.mrf.mxu0  ;;  %v936_v14 = vpop.f32.mrf.mxu2 }
 0x156   :  { %v925_v13 = vpop.f32.mrf.mxu1  ;;  %v937_v4 = vadd.f32 %v936_v14, %v924_v19 }
 0x158   :  { %v949_v15 = vpop.f32.mrf.mxu3 }
 0x159   :  { %v950_v20 = vadd.f32 %v949_v15, %v937_v4 }
 0x15d   :  { %v938_v17 = vpop.f32.mrf.mxu2 }
 0x160   :  { %v951_v18 = vpop.f32.mrf.mxu3 }
 0x18d   :  { %v962_v21 = vpop.f32.mrf.mxu0 }
 0x18e   :  { %v963_v22 = vadd.f32 %v962_v21, %v950_v20  ;;  %v975_v23 = vpop.f32.mrf.mxu1 }
 0x190   :  { %v976_v24 = vadd.f32 %v975_v23, %v963_v22 }
 0x192   :  { %v980_v25 = vmax.f32 %v976_v24, 0.0 }
 0x194   :  { %982 = vst [vmem:[#allocation8 + $0x8] sm:$0xff] %v980_v25 }
 0x195   :  { %v964_v16 = vpop.f32.mrf.mxu0  ;;  %993 = dma.vmem_to_hbm [thread:$0]  %s989_s2, 256, %s991_s30, [#allocation4]  }
 0x196   :  { %v977_v26 = vpop.f32.mrf.mxu1 }
 0x197   :  { %1667 = dma.done.wait [#allocation4], 256  }
 0x198   :  { %1668 = vsyncadd [#allocation4], 4294967040 }
 0x199   :  { %998 = vsyncpa [#allocation3], 1 }
 0x19a   :  { %999 = vsyncpa [#allocation6], 1 }
 0x19b   :  { %1000 = vsyncpa [#allocation4], 1 }

</bundles_post_ra>
